<compile_context>
chip_gen: v5e
topology: v5e:2x2
jax: 0.10.0
libtpu: 0.0.40
codegen_flags: <defaults>
</compile_context>

<pallas_src>
import math
from functools import partial

import jax
import jax.numpy as jnp
from jax import lax
from jax.experimental import pallas as pl
from jax.experimental.pallas import tpu as pltpu


# --------------------------- fused Pallas kernel -----------------------------

def _fused_attentions_kernel(x_ref, wqkv1_ref, wo1_ref, bo1_ref,
                             wq2_ref, wkv2_ref, wo2_ref, bo2_ref,
                             wn_ref, bn_ref, o_ref, *, heads, d_head, scale):
    f32 = jnp.float32
    inner = heads * d_head
    x = x_ref[0]                                                    # (N, dim)

    def mha_project(q, k, v, wo, bo):
        # q: (Nq, inner) already scaled, k/v: (Nk, inner), wo: (inner, dout), bo: (1, dout)
        # Per-head attention; the head-merge + output projection are fused as a sum of
        # per-head (Nq, d_head) @ (d_head, dout) matmuls (mathematically identical to
        # concat-then-project, but needs no concat/transpose inside the kernel).
        out = None
        for h in range(heads):
            sl = slice(h * d_head, (h + 1) * d_head)
            qh, kh, vh = q[:, sl], k[:, sl], v[:, sl]
            # sim = qh @ kh^T without an explicit transpose (contract last dims).
            sim = lax.dot_general(qh, kh, (((1,), (1,)), ((), ())),
                                  preferred_element_type=f32)       # (Nq, Nk)
            m = jnp.max(sim, axis=-1, keepdims=True)
            p = jnp.exp(sim - m)
            attn = p * pl.reciprocal(jnp.sum(p, axis=-1, keepdims=True), approx=True)
            oh = jnp.dot(attn, vh, preferred_element_type=f32)      # (Nq, d_head)
            contrib = jnp.dot(oh, wo[sl, :], preferred_element_type=f32)  # (Nq, dout)
            out = contrib if out is None else out + contrib
        return out + bo

    # ---- attn1: self-attention, fused QKV projection ------------------------
    qkv = jnp.dot(x, wqkv1_ref[...], preferred_element_type=f32)    # (N, 3*inner)
    q1 = qkv[:, :inner] * scale
    k1 = qkv[:, inner:2 * inner]
    v1 = qkv[:, 2 * inner:]
    x1 = mha_project(q1, k1, v1, wo1_ref[...], bo1_ref[...])        # (N, dim)

    # ---- attn2: cross-attention (context = original x), fused KV projection -
    q2 = jnp.dot(x1, wq2_ref[...], preferred_element_type=f32) * scale   # (N, inner)
    kv2 = jnp.dot(x, wkv2_ref[...], preferred_element_type=f32)          # (N, 2*inner)
    k2 = kv2[:, :inner]
    v2 = kv2[:, inner:]
    x2 = mha_project(q2, k2, v2, wo2_ref[...], bo2_ref[...])        # (N, dim)

    # ---- net: Dropout(0.0) (identity) + Linear(dim, dim) --------------------
    x3 = jnp.dot(x2, wn_ref[...], preferred_element_type=f32) + bn_ref[...]
    o_ref[0] = x3.astype(o_ref.dtype)


def attentions_forward(x, params, heads, d_head):
    """Fused Attentions.forward. x: (B, N, dim) -> (B, N, dim)."""
    B, N, dim = x.shape
    scale = d_head ** -0.5
    kernel = partial(_fused_attentions_kernel,
                     heads=heads, d_head=d_head, scale=scale)

    weight_names = ("wqkv1", "wo1", "bo1", "wq2", "wkv2", "wo2", "bo2", "wn", "bn")
    weight_specs = [pl.BlockSpec(params[n].shape, lambda b: (0, 0))
                    for n in weight_names]

    return pl.pallas_call(
        kernel,
        out_shape=jax.ShapeDtypeStruct((B, N, dim), x.dtype),
        grid=(B,),
        in_specs=[pl.BlockSpec((1, N, dim), lambda b: (b, 0, 0))] + weight_specs,
        out_specs=pl.BlockSpec((1, N, dim), lambda b: (b, 0, 0)),
        compiler_params=pltpu.CompilerParams(
            dimension_semantics=("parallel",)),   # shard batch across TCs (v7x megacore)
    )(x, *(params[n] for n in weight_names))


# --------------------------- pure-JAX reference ------------------------------

def attentions_reference(x, params, heads, d_head):
    inner = heads * d_head
    scale = d_head ** -0.5

    def mha(q, k, v):
        B, Nq, _ = q.shape
        Nk = k.shape[1]
        qh = q.reshape(B, Nq, heads, d_head).transpose(0, 2, 1, 3)
        kh = k.reshape(B, Nk, heads, d_head).transpose(0, 2, 1, 3)
        vh = v.reshape(B, Nk, heads, d_head).transpose(0, 2, 1, 3)
        sim = jnp.einsum('bhqd,bhkd->bhqk', qh, kh) * scale
        attn = jax.nn.softmax(sim, axis=-1)
        out = jnp.einsum('bhqk,bhkd->bhqd', attn, vh)
        return out.transpose(0, 2, 1, 3).reshape(B, Nq, inner)

    wq1 = params["wqkv1"][:, :inner]
    wk1 = params["wqkv1"][:, inner:2 * inner]
    wv1 = params["wqkv1"][:, 2 * inner:]
    x1 = mha(x @ wq1, x @ wk1, x @ wv1) @ params["wo1"] + params["bo1"]

    wk2 = params["wkv2"][:, :inner]
    wv2 = params["wkv2"][:, inner:]
    x2 = mha(x1 @ params["wq2"], x @ wk2, x @ wv2) @ params["wo2"] + params["bo2"]

    return x2 @ params["wn"] + params["bn"]


# --------------------------- deterministic init -------------------------------

def init_linear(key, d_in, d_out, bias, dtype=jnp.float32):
    kw, kb = jax.random.split(key)
    bound = 1.0 / math.sqrt(d_in)
    w = jax.random.uniform(kw, (d_in, d_out), dtype, -bound, bound)
    b = (jax.random.uniform(kb, (1, d_out), dtype, -bound, bound)
         if bias else None)
    return w, b


def init_attentions(key, dim, n_heads, d_head, context_dim, dtype=jnp.float32):
    inner = n_heads * d_head
    k1, k2, k3, k4, k5, k6, k7, k8, k9 = jax.random.split(key, 9)

    wq1, _ = init_linear(k1, dim, inner, bias=False, dtype=dtype)
    wk1, _ = init_linear(k2, dim, inner, bias=False, dtype=dtype)
    wv1, _ = init_linear(k3, dim, inner, bias=False, dtype=dtype)
    wo1, bo1 = init_linear(k4, inner, dim, bias=True, dtype=dtype)

    wq2, _ = init_linear(k5, dim, inner, bias=False, dtype=dtype)
    wk2, _ = init_linear(k6, context_dim, inner, bias=False, dtype=dtype)
    wv2, _ = init_linear(k7, context_dim, inner, bias=False, dtype=dtype)
    wo2, bo2 = init_linear(k8, inner, dim, bias=True, dtype=dtype)

    wn, bn = init_linear(k9, dim, dim, bias=True, dtype=dtype)

    return {
        # attn1: self-attention -> fuse q/k/v projections into one weight
        "wqkv1": jnp.concatenate([wq1, wk1, wv1], axis=1),   # (dim, 3*inner)
        "wo1": wo1, "bo1": bo1,
        # attn2: cross-attention -> fuse k/v projections (q takes a different input)
        "wq2": wq2,
        "wkv2": jnp.concatenate([wk2, wv2], axis=1),         # (context_dim, 2*inner)
        "wo2": wo2, "bo2": bo2,
        # final Linear(dim, dim)
        "wn": wn, "bn": bn,
    }


# --------------------------- main ---------------------------------------------

if __name__ == "__main__":
    B, N = 2, 8          # batch, sequence
    dim = 32             # query/channel dim
    n_heads, d_head = 4, 8
    context_dim = dim    # forward passes x itself as context for attn2

    key = jax.random.PRNGKey(0)
    k_x, k_p = jax.random.split(key)
    x = jax.random.normal(k_x, (B, N, dim), dtype=jnp.float32)
    params = init_attentions(k_p, dim, n_heads, d_head, context_dim)

    fwd = jax.jit(partial(attentions_forward, heads=n_heads, d_head=d_head))
    y = fwd(x, params)
    jax.block_until_ready(y)

    assert y.shape == (B, N, dim) and y.dtype == jnp.float32

    y_ref = attentions_reference(x, params, n_heads, d_head)
    max_err = float(jnp.max(jnp.abs(y - y_ref)))
    assert max_err < 2e-2, f"mismatch vs reference: {max_err}"

    print("KERNEL_OK")
</pallas_src>

<mosaic_0001>
module attributes {stable_mosaic.version = 11 : i64} {
  func.func @_fused_attentions_kernel(%arg0: i32, %arg1: memref<1x8x32xf32, #tpu.memory_space<vmem>>, %arg2: memref<32x96xf32, #tpu.memory_space<vmem>>, %arg3: memref<32x32xf32, #tpu.memory_space<vmem>>, %arg4: memref<1x32xf32, #tpu.memory_space<vmem>>, %arg5: memref<32x32xf32, #tpu.memory_space<vmem>>, %arg6: memref<32x64xf32, #tpu.memory_space<vmem>>, %arg7: memref<32x32xf32, #tpu.memory_space<vmem>>, %arg8: memref<1x32xf32, #tpu.memory_space<vmem>>, %arg9: memref<32x32xf32, #tpu.memory_space<vmem>>, %arg10: memref<1x32xf32, #tpu.memory_space<vmem>>, %arg11: memref<1x8x32xf32, #tpu.memory_space<vmem>>) attributes {dimension_semantics = [#tpu.dimension_semantics<parallel>], iteration_bounds = array<i64: 2>, scalar_prefetch = 0 : i64, scratch_operands = 0 : i64, tpu.core_type = #tpu.core_type<tc>, window_params = [{transform_indices = @transform_0, window_bounds = array<i64: 1, 8, 32>}, {pipeline_mode = #tpu.pipeline_mode<synchronous>, transform_indices = @transform_1, window_bounds = array<i64: 32, 96>}, {pipeline_mode = #tpu.pipeline_mode<synchronous>, transform_indices = @transform_2, window_bounds = array<i64: 32, 32>}, {pipeline_mode = #tpu.pipeline_mode<synchronous>, transform_indices = @transform_3, window_bounds = array<i64: 1, 32>}, {pipeline_mode = #tpu.pipeline_mode<synchronous>, transform_indices = @transform_4, window_bounds = array<i64: 32, 32>}, {pipeline_mode = #tpu.pipeline_mode<synchronous>, transform_indices = @transform_5, window_bounds = array<i64: 32, 64>}, {pipeline_mode = #tpu.pipeline_mode<synchronous>, transform_indices = @transform_6, window_bounds = array<i64: 32, 32>}, {pipeline_mode = #tpu.pipeline_mode<synchronous>, transform_indices = @transform_7, window_bounds = array<i64: 1, 32>}, {pipeline_mode = #tpu.pipeline_mode<synchronous>, transform_indices = @transform_8, window_bounds = array<i64: 32, 32>}, {pipeline_mode = #tpu.pipeline_mode<synchronous>, transform_indices = @transform_9, window_bounds = array<i64: 1, 32>}, {transform_indices = @transform_10, window_bounds = array<i64: 1, 8, 32>}]} {
    %c0 = arith.constant 0 : index
    %c0_0 = arith.constant 0 : index
    %c0_1 = arith.constant 0 : index
    %0 = vector.load %arg1[%c0, %c0_0, %c0_1] : memref<1x8x32xf32, #tpu.memory_space<vmem>>, vector<1x8x32xf32>
    %1 = vector.shape_cast %0 : vector<1x8x32xf32> to vector<8x32xf32>
    %c0_2 = arith.constant 0 : index
    %c0_3 = arith.constant 0 : index
    %2 = vector.load %arg2[%c0_2, %c0_3] : memref<32x96xf32, #tpu.memory_space<vmem>>, vector<32x96xf32>
    %cst = arith.constant dense<0.000000e+00> : vector<8x96xf32>
    %3 = tpu.matmul %1, %2, %cst {dimension_numbers = #tpu.dot_dimension_numbers<[1], [0], [0], [1], [0, 0, 1, 1], [], []>} : vector<8x32xf32>, vector<32x96xf32>, vector<8x96xf32> -> vector<8x96xf32>
    %4 = vector.extract_strided_slice %3 {offsets = [0, 0], sizes = [8, 32], strides = [1, 1]} : vector<8x96xf32> to vector<8x32xf32>
    %cst_4 = arith.constant 0.353553385 : f32
    %5 = vector.broadcast %cst_4 : f32 to vector<8x32xf32>
    %6 = arith.mulf %4, %5 : vector<8x32xf32>
    %7 = vector.extract_strided_slice %3 {offsets = [0, 32], sizes = [8, 32], strides = [1, 1]} : vector<8x96xf32> to vector<8x32xf32>
    %8 = vector.extract_strided_slice %3 {offsets = [0, 64], sizes = [8, 32], strides = [1, 1]} : vector<8x96xf32> to vector<8x32xf32>
    %c0_5 = arith.constant 0 : index
    %c0_6 = arith.constant 0 : index
    %9 = vector.load %arg3[%c0_5, %c0_6] : memref<32x32xf32, #tpu.memory_space<vmem>>, vector<32x32xf32>
    %c0_7 = arith.constant 0 : index
    %c0_8 = arith.constant 0 : index
    %10 = vector.load %arg4[%c0_7, %c0_8] : memref<1x32xf32, #tpu.memory_space<vmem>>, vector<1x32xf32>
    %11 = vector.extract_strided_slice %6 {offsets = [0, 0], sizes = [8, 8], strides = [1, 1]} : vector<8x32xf32> to vector<8x8xf32>
    %12 = vector.extract_strided_slice %7 {offsets = [0, 0], sizes = [8, 8], strides = [1, 1]} : vector<8x32xf32> to vector<8x8xf32>
    %13 = vector.extract_strided_slice %8 {offsets = [0, 0], sizes = [8, 8], strides = [1, 1]} : vector<8x32xf32> to vector<8x8xf32>
    %cst_9 = arith.constant dense<0.000000e+00> : vector<8x8xf32>
    %14 = tpu.matmul %11, %12, %cst_9 {dimension_numbers = #tpu.dot_dimension_numbers<[1], [1], [0], [0], [0, 0, 1, 0], [], []>} : vector<8x8xf32>, vector<8x8xf32>, vector<8x8xf32> -> vector<8x8xf32>
    %cst_10 = arith.constant dense<0xFF800000> : vector<8xf32>
    %15 = vector.multi_reduction <maximumf>, %14, %cst_10 [1] : vector<8x8xf32> to vector<8xf32>
    %16 = vector.shape_cast %15 : vector<8xf32> to vector<8x1xf32>
    %17 = vector.broadcast %16 : vector<8x1xf32> to vector<8x8xf32>
    %18 = arith.subf %14, %17 : vector<8x8xf32>
    %19 = math.exp %18 : vector<8x8xf32>
    %cst_11 = arith.constant dense<0.000000e+00> : vector<8xf32>
    %20 = vector.multi_reduction <add>, %19, %cst_11 [1] : vector<8x8xf32> to vector<8xf32>
    %21 = vector.shape_cast %20 : vector<8xf32> to vector<8x1xf32>
    %22 = tpu.reciprocal %21 {approx = true} : vector<8x1xf32> -> vector<8x1xf32>
    %23 = vector.broadcast %22 : vector<8x1xf32> to vector<8x8xf32>
    %24 = arith.mulf %19, %23 : vector<8x8xf32>
    %cst_12 = arith.constant dense<0.000000e+00> : vector<8x8xf32>
    %25 = tpu.matmul %24, %13, %cst_12 {dimension_numbers = #tpu.dot_dimension_numbers<[1], [0], [0], [1], [0, 0, 1, 1], [], []>} : vector<8x8xf32>, vector<8x8xf32>, vector<8x8xf32> -> vector<8x8xf32>
    %26 = vector.extract_strided_slice %9 {offsets = [0, 0], sizes = [8, 32], strides = [1, 1]} : vector<32x32xf32> to vector<8x32xf32>
    %cst_13 = arith.constant dense<0.000000e+00> : vector<8x32xf32>
    %27 = tpu.matmul %25, %26, %cst_13 {dimension_numbers = #tpu.dot_dimension_numbers<[1], [0], [0], [1], [0, 0, 1, 1], [], []>} : vector<8x8xf32>, vector<8x32xf32>, vector<8x32xf32> -> vector<8x32xf32>
    %28 = vector.extract_strided_slice %6 {offsets = [0, 8], sizes = [8, 8], strides = [1, 1]} : vector<8x32xf32> to vector<8x8xf32>
    %29 = vector.extract_strided_slice %7 {offsets = [0, 8], sizes = [8, 8], strides = [1, 1]} : vector<8x32xf32> to vector<8x8xf32>
    %30 = vector.extract_strided_slice %8 {offsets = [0, 8], sizes = [8, 8], strides = [1, 1]} : vector<8x32xf32> to vector<8x8xf32>
    %cst_14 = arith.constant dense<0.000000e+00> : vector<8x8xf32>
    %31 = tpu.matmul %28, %29, %cst_14 {dimension_numbers = #tpu.dot_dimension_numbers<[1], [1], [0], [0], [0, 0, 1, 0], [], []>} : vector<8x8xf32>, vector<8x8xf32>, vector<8x8xf32> -> vector<8x8xf32>
    %cst_15 = arith.constant dense<0xFF800000> : vector<8xf32>
    %32 = vector.multi_reduction <maximumf>, %31, %cst_15 [1] : vector<8x8xf32> to vector<8xf32>
    %33 = vector.shape_cast %32 : vector<8xf32> to vector<8x1xf32>
    %34 = vector.broadcast %33 : vector<8x1xf32> to vector<8x8xf32>
    %35 = arith.subf %31, %34 : vector<8x8xf32>
    %36 = math.exp %35 : vector<8x8xf32>
    %cst_16 = arith.constant dense<0.000000e+00> : vector<8xf32>
    %37 = vector.multi_reduction <add>, %36, %cst_16 [1] : vector<8x8xf32> to vector<8xf32>
    %38 = vector.shape_cast %37 : vector<8xf32> to vector<8x1xf32>
    %39 = tpu.reciprocal %38 {approx = true} : vector<8x1xf32> -> vector<8x1xf32>
    %40 = vector.broadcast %39 : vector<8x1xf32> to vector<8x8xf32>
    %41 = arith.mulf %36, %40 : vector<8x8xf32>
    %cst_17 = arith.constant dense<0.000000e+00> : vector<8x8xf32>
    %42 = tpu.matmul %41, %30, %cst_17 {dimension_numbers = #tpu.dot_dimension_numbers<[1], [0], [0], [1], [0, 0, 1, 1], [], []>} : vector<8x8xf32>, vector<8x8xf32>, vector<8x8xf32> -> vector<8x8xf32>
    %43 = vector.extract_strided_slice %9 {offsets = [8, 0], sizes = [8, 32], strides = [1, 1]} : vector<32x32xf32> to vector<8x32xf32>
    %cst_18 = arith.constant dense<0.000000e+00> : vector<8x32xf32>
    %44 = tpu.matmul %42, %43, %cst_18 {dimension_numbers = #tpu.dot_dimension_numbers<[1], [0], [0], [1], [0, 0, 1, 1], [], []>} : vector<8x8xf32>, vector<8x32xf32>, vector<8x32xf32> -> vector<8x32xf32>
    %45 = arith.addf %27, %44 : vector<8x32xf32>
    %46 = vector.extract_strided_slice %6 {offsets = [0, 16], sizes = [8, 8], strides = [1, 1]} : vector<8x32xf32> to vector<8x8xf32>
    %47 = vector.extract_strided_slice %7 {offsets = [0, 16], sizes = [8, 8], strides = [1, 1]} : vector<8x32xf32> to vector<8x8xf32>
    %48 = vector.extract_strided_slice %8 {offsets = [0, 16], sizes = [8, 8], strides = [1, 1]} : vector<8x32xf32> to vector<8x8xf32>
    %cst_19 = arith.constant dense<0.000000e+00> : vector<8x8xf32>
    %49 = tpu.matmul %46, %47, %cst_19 {dimension_numbers = #tpu.dot_dimension_numbers<[1], [1], [0], [0], [0, 0, 1, 0], [], []>} : vector<8x8xf32>, vector<8x8xf32>, vector<8x8xf32> -> vector<8x8xf32>
    %cst_20 = arith.constant dense<0xFF800000> : vector<8xf32>
    %50 = vector.multi_reduction <maximumf>, %49, %cst_20 [1] : vector<8x8xf32> to vector<8xf32>
    %51 = vector.shape_cast %50 : vector<8xf32> to vector<8x1xf32>
    %52 = vector.broadcast %51 : vector<8x1xf32> to vector<8x8xf32>
    %53 = arith.subf %49, %52 : vector<8x8xf32>
    %54 = math.exp %53 : vector<8x8xf32>
    %cst_21 = arith.constant dense<0.000000e+00> : vector<8xf32>
    %55 = vector.multi_reduction <add>, %54, %cst_21 [1] : vector<8x8xf32> to vector<8xf32>
    %56 = vector.shape_cast %55 : vector<8xf32> to vector<8x1xf32>
    %57 = tpu.reciprocal %56 {approx = true} : vector<8x1xf32> -> vector<8x1xf32>
    %58 = vector.broadcast %57 : vector<8x1xf32> to vector<8x8xf32>
    %59 = arith.mulf %54, %58 : vector<8x8xf32>
    %cst_22 = arith.constant dense<0.000000e+00> : vector<8x8xf32>
    %60 = tpu.matmul %59, %48, %cst_22 {dimension_numbers = #tpu.dot_dimension_numbers<[1], [0], [0], [1], [0, 0, 1, 1], [], []>} : vector<8x8xf32>, vector<8x8xf32>, vector<8x8xf32> -> vector<8x8xf32>
    %61 = vector.extract_strided_slice %9 {offsets = [16, 0], sizes = [8, 32], strides = [1, 1]} : vector<32x32xf32> to vector<8x32xf32>
    %cst_23 = arith.constant dense<0.000000e+00> : vector<8x32xf32>
    %62 = tpu.matmul %60, %61, %cst_23 {dimension_numbers = #tpu.dot_dimension_numbers<[1], [0], [0], [1], [0, 0, 1, 1], [], []>} : vector<8x8xf32>, vector<8x32xf32>, vector<8x32xf32> -> vector<8x32xf32>
    %63 = arith.addf %45, %62 : vector<8x32xf32>
    %64 = vector.extract_strided_slice %6 {offsets = [0, 24], sizes = [8, 8], strides = [1, 1]} : vector<8x32xf32> to vector<8x8xf32>
    %65 = vector.extract_strided_slice %7 {offsets = [0, 24], sizes = [8, 8], strides = [1, 1]} : vector<8x32xf32> to vector<8x8xf32>
    %66 = vector.extract_strided_slice %8 {offsets = [0, 24], sizes = [8, 8], strides = [1, 1]} : vector<8x32xf32> to vector<8x8xf32>
    %cst_24 = arith.constant dense<0.000000e+00> : vector<8x8xf32>
    %67 = tpu.matmul %64, %65, %cst_24 {dimension_numbers = #tpu.dot_dimension_numbers<[1], [1], [0], [0], [0, 0, 1, 0], [], []>} : vector<8x8xf32>, vector<8x8xf32>, vector<8x8xf32> -> vector<8x8xf32>
    %cst_25 = arith.constant dense<0xFF800000> : vector<8xf32>
    %68 = vector.multi_reduction <maximumf>, %67, %cst_25 [1] : vector<8x8xf32> to vector<8xf32>
    %69 = vector.shape_cast %68 : vector<8xf32> to vector<8x1xf32>
    %70 = vector.broadcast %69 : vector<8x1xf32> to vector<8x8xf32>
    %71 = arith.subf %67, %70 : vector<8x8xf32>
    %72 = math.exp %71 : vector<8x8xf32>
    %cst_26 = arith.constant dense<0.000000e+00> : vector<8xf32>
    %73 = vector.multi_reduction <add>, %72, %cst_26 [1] : vector<8x8xf32> to vector<8xf32>
    %74 = vector.shape_cast %73 : vector<8xf32> to vector<8x1xf32>
    %75 = tpu.reciprocal %74 {approx = true} : vector<8x1xf32> -> vector<8x1xf32>
    %76 = vector.broadcast %75 : vector<8x1xf32> to vector<8x8xf32>
    %77 = arith.mulf %72, %76 : vector<8x8xf32>
    %cst_27 = arith.constant dense<0.000000e+00> : vector<8x8xf32>
    %78 = tpu.matmul %77, %66, %cst_27 {dimension_numbers = #tpu.dot_dimension_numbers<[1], [0], [0], [1], [0, 0, 1, 1], [], []>} : vector<8x8xf32>, vector<8x8xf32>, vector<8x8xf32> -> vector<8x8xf32>
    %79 = vector.extract_strided_slice %9 {offsets = [24, 0], sizes = [8, 32], strides = [1, 1]} : vector<32x32xf32> to vector<8x32xf32>
    %cst_28 = arith.constant dense<0.000000e+00> : vector<8x32xf32>
    %80 = tpu.matmul %78, %79, %cst_28 {dimension_numbers = #tpu.dot_dimension_numbers<[1], [0], [0], [1], [0, 0, 1, 1], [], []>} : vector<8x8xf32>, vector<8x32xf32>, vector<8x32xf32> -> vector<8x32xf32>
    %81 = arith.addf %63, %80 : vector<8x32xf32>
    %82 = vector.broadcast %10 : vector<1x32xf32> to vector<8x32xf32>
    %83 = arith.addf %81, %82 : vector<8x32xf32>
    %c0_29 = arith.constant 0 : index
    %c0_30 = arith.constant 0 : index
    %84 = vector.load %arg5[%c0_29, %c0_30] : memref<32x32xf32, #tpu.memory_space<vmem>>, vector<32x32xf32>
    %cst_31 = arith.constant dense<0.000000e+00> : vector<8x32xf32>
    %85 = tpu.matmul %83, %84, %cst_31 {dimension_numbers = #tpu.dot_dimension_numbers<[1], [0], [0], [1], [0, 0, 1, 1], [], []>} : vector<8x32xf32>, vector<32x32xf32>, vector<8x32xf32> -> vector<8x32xf32>
    %cst_32 = arith.constant 0.353553385 : f32
    %86 = vector.broadcast %cst_32 : f32 to vector<8x32xf32>
    %87 = arith.mulf %85, %86 : vector<8x32xf32>
    %c0_33 = arith.constant 0 : index
    %c0_34 = arith.constant 0 : index
    %88 = vector.load %arg6[%c0_33, %c0_34] : memref<32x64xf32, #tpu.memory_space<vmem>>, vector<32x64xf32>
    %cst_35 = arith.constant dense<0.000000e+00> : vector<8x64xf32>
    %89 = tpu.matmul %1, %88, %cst_35 {dimension_numbers = #tpu.dot_dimension_numbers<[1], [0], [0], [1], [0, 0, 1, 1], [], []>} : vector<8x32xf32>, vector<32x64xf32>, vector<8x64xf32> -> vector<8x64xf32>
    %90 = vector.extract_strided_slice %89 {offsets = [0, 0], sizes = [8, 32], strides = [1, 1]} : vector<8x64xf32> to vector<8x32xf32>
    %91 = vector.extract_strided_slice %89 {offsets = [0, 32], sizes = [8, 32], strides = [1, 1]} : vector<8x64xf32> to vector<8x32xf32>
    %c0_36 = arith.constant 0 : index
    %c0_37 = arith.constant 0 : index
    %92 = vector.load %arg7[%c0_36, %c0_37] : memref<32x32xf32, #tpu.memory_space<vmem>>, vector<32x32xf32>
    %c0_38 = arith.constant 0 : index
    %c0_39 = arith.constant 0 : index
    %93 = vector.load %arg8[%c0_38, %c0_39] : memref<1x32xf32, #tpu.memory_space<vmem>>, vector<1x32xf32>
    %94 = vector.extract_strided_slice %87 {offsets = [0, 0], sizes = [8, 8], strides = [1, 1]} : vector<8x32xf32> to vector<8x8xf32>
    %95 = vector.extract_strided_slice %90 {offsets = [0, 0], sizes = [8, 8], strides = [1, 1]} : vector<8x32xf32> to vector<8x8xf32>
    %96 = vector.extract_strided_slice %91 {offsets = [0, 0], sizes = [8, 8], strides = [1, 1]} : vector<8x32xf32> to vector<8x8xf32>
    %cst_40 = arith.constant dense<0.000000e+00> : vector<8x8xf32>
    %97 = tpu.matmul %94, %95, %cst_40 {dimension_numbers = #tpu.dot_dimension_numbers<[1], [1], [0], [0], [0, 0, 1, 0], [], []>} : vector<8x8xf32>, vector<8x8xf32>, vector<8x8xf32> -> vector<8x8xf32>
    %cst_41 = arith.constant dense<0xFF800000> : vector<8xf32>
    %98 = vector.multi_reduction <maximumf>, %97, %cst_41 [1] : vector<8x8xf32> to vector<8xf32>
    %99 = vector.shape_cast %98 : vector<8xf32> to vector<8x1xf32>
    %100 = vector.broadcast %99 : vector<8x1xf32> to vector<8x8xf32>
    %101 = arith.subf %97, %100 : vector<8x8xf32>
    %102 = math.exp %101 : vector<8x8xf32>
    %cst_42 = arith.constant dense<0.000000e+00> : vector<8xf32>
    %103 = vector.multi_reduction <add>, %102, %cst_42 [1] : vector<8x8xf32> to vector<8xf32>
    %104 = vector.shape_cast %103 : vector<8xf32> to vector<8x1xf32>
    %105 = tpu.reciprocal %104 {approx = true} : vector<8x1xf32> -> vector<8x1xf32>
    %106 = vector.broadcast %105 : vector<8x1xf32> to vector<8x8xf32>
    %107 = arith.mulf %102, %106 : vector<8x8xf32>
    %cst_43 = arith.constant dense<0.000000e+00> : vector<8x8xf32>
    %108 = tpu.matmul %107, %96, %cst_43 {dimension_numbers = #tpu.dot_dimension_numbers<[1], [0], [0], [1], [0, 0, 1, 1], [], []>} : vector<8x8xf32>, vector<8x8xf32>, vector<8x8xf32> -> vector<8x8xf32>
    %109 = vector.extract_strided_slice %92 {offsets = [0, 0], sizes = [8, 32], strides = [1, 1]} : vector<32x32xf32> to vector<8x32xf32>
    %cst_44 = arith.constant dense<0.000000e+00> : vector<8x32xf32>
    %110 = tpu.matmul %108, %109, %cst_44 {dimension_numbers = #tpu.dot_dimension_numbers<[1], [0], [0], [1], [0, 0, 1, 1], [], []>} : vector<8x8xf32>, vector<8x32xf32>, vector<8x32xf32> -> vector<8x32xf32>
    %111 = vector.extract_strided_slice %87 {offsets = [0, 8], sizes = [8, 8], strides = [1, 1]} : vector<8x32xf32> to vector<8x8xf32>
    %112 = vector.extract_strided_slice %90 {offsets = [0, 8], sizes = [8, 8], strides = [1, 1]} : vector<8x32xf32> to vector<8x8xf32>
    %113 = vector.extract_strided_slice %91 {offsets = [0, 8], sizes = [8, 8], strides = [1, 1]} : vector<8x32xf32> to vector<8x8xf32>
    %cst_45 = arith.constant dense<0.000000e+00> : vector<8x8xf32>
    %114 = tpu.matmul %111, %112, %cst_45 {dimension_numbers = #tpu.dot_dimension_numbers<[1], [1], [0], [0], [0, 0, 1, 0], [], []>} : vector<8x8xf32>, vector<8x8xf32>, vector<8x8xf32> -> vector<8x8xf32>
    %cst_46 = arith.constant dense<0xFF800000> : vector<8xf32>
    %115 = vector.multi_reduction <maximumf>, %114, %cst_46 [1] : vector<8x8xf32> to vector<8xf32>
    %116 = vector.shape_cast %115 : vector<8xf32> to vector<8x1xf32>
    %117 = vector.broadcast %116 : vector<8x1xf32> to vector<8x8xf32>
    %118 = arith.subf %114, %117 : vector<8x8xf32>
    %119 = math.exp %118 : vector<8x8xf32>
    %cst_47 = arith.constant dense<0.000000e+00> : vector<8xf32>
    %120 = vector.multi_reduction <add>, %119, %cst_47 [1] : vector<8x8xf32> to vector<8xf32>
    %121 = vector.shape_cast %120 : vector<8xf32> to vector<8x1xf32>
    %122 = tpu.reciprocal %121 {approx = true} : vector<8x1xf32> -> vector<8x1xf32>
    %123 = vector.broadcast %122 : vector<8x1xf32> to vector<8x8xf32>
    %124 = arith.mulf %119, %123 : vector<8x8xf32>
    %cst_48 = arith.constant dense<0.000000e+00> : vector<8x8xf32>
    %125 = tpu.matmul %124, %113, %cst_48 {dimension_numbers = #tpu.dot_dimension_numbers<[1], [0], [0], [1], [0, 0, 1, 1], [], []>} : vector<8x8xf32>, vector<8x8xf32>, vector<8x8xf32> -> vector<8x8xf32>
    %126 = vector.extract_strided_slice %92 {offsets = [8, 0], sizes = [8, 32], strides = [1, 1]} : vector<32x32xf32> to vector<8x32xf32>
    %cst_49 = arith.constant dense<0.000000e+00> : vector<8x32xf32>
    %127 = tpu.matmul %125, %126, %cst_49 {dimension_numbers = #tpu.dot_dimension_numbers<[1], [0], [0], [1], [0, 0, 1, 1], [], []>} : vector<8x8xf32>, vector<8x32xf32>, vector<8x32xf32> -> vector<8x32xf32>
    %128 = arith.addf %110, %127 : vector<8x32xf32>
    %129 = vector.extract_strided_slice %87 {offsets = [0, 16], sizes = [8, 8], strides = [1, 1]} : vector<8x32xf32> to vector<8x8xf32>
    %130 = vector.extract_strided_slice %90 {offsets = [0, 16], sizes = [8, 8], strides = [1, 1]} : vector<8x32xf32> to vector<8x8xf32>
    %131 = vector.extract_strided_slice %91 {offsets = [0, 16], sizes = [8, 8], strides = [1, 1]} : vector<8x32xf32> to vector<8x8xf32>
    %cst_50 = arith.constant dense<0.000000e+00> : vector<8x8xf32>
    %132 = tpu.matmul %129, %130, %cst_50 {dimension_numbers = #tpu.dot_dimension_numbers<[1], [1], [0], [0], [0, 0, 1, 0], [], []>} : vector<8x8xf32>, vector<8x8xf32>, vector<8x8xf32> -> vector<8x8xf32>
    %cst_51 = arith.constant dense<0xFF800000> : vector<8xf32>
    %133 = vector.multi_reduction <maximumf>, %132, %cst_51 [1] : vector<8x8xf32> to vector<8xf32>
    %134 = vector.shape_cast %133 : vector<8xf32> to vector<8x1xf32>
    %135 = vector.broadcast %134 : vector<8x1xf32> to vector<8x8xf32>
    %136 = arith.subf %132, %135 : vector<8x8xf32>
    %137 = math.exp %136 : vector<8x8xf32>
    %cst_52 = arith.constant dense<0.000000e+00> : vector<8xf32>
    %138 = vector.multi_reduction <add>, %137, %cst_52 [1] : vector<8x8xf32> to vector<8xf32>
    %139 = vector.shape_cast %138 : vector<8xf32> to vector<8x1xf32>
    %140 = tpu.reciprocal %139 {approx = true} : vector<8x1xf32> -> vector<8x1xf32>
    %141 = vector.broadcast %140 : vector<8x1xf32> to vector<8x8xf32>
    %142 = arith.mulf %137, %141 : vector<8x8xf32>
    %cst_53 = arith.constant dense<0.000000e+00> : vector<8x8xf32>
    %143 = tpu.matmul %142, %131, %cst_53 {dimension_numbers = #tpu.dot_dimension_numbers<[1], [0], [0], [1], [0, 0, 1, 1], [], []>} : vector<8x8xf32>, vector<8x8xf32>, vector<8x8xf32> -> vector<8x8xf32>
    %144 = vector.extract_strided_slice %92 {offsets = [16, 0], sizes = [8, 32], strides = [1, 1]} : vector<32x32xf32> to vector<8x32xf32>
    %cst_54 = arith.constant dense<0.000000e+00> : vector<8x32xf32>
    %145 = tpu.matmul %143, %144, %cst_54 {dimension_numbers = #tpu.dot_dimension_numbers<[1], [0], [0], [1], [0, 0, 1, 1], [], []>} : vector<8x8xf32>, vector<8x32xf32>, vector<8x32xf32> -> vector<8x32xf32>
    %146 = arith.addf %128, %145 : vector<8x32xf32>
    %147 = vector.extract_strided_slice %87 {offsets = [0, 24], sizes = [8, 8], strides = [1, 1]} : vector<8x32xf32> to vector<8x8xf32>
    %148 = vector.extract_strided_slice %90 {offsets = [0, 24], sizes = [8, 8], strides = [1, 1]} : vector<8x32xf32> to vector<8x8xf32>
    %149 = vector.extract_strided_slice %91 {offsets = [0, 24], sizes = [8, 8], strides = [1, 1]} : vector<8x32xf32> to vector<8x8xf32>
    %cst_55 = arith.constant dense<0.000000e+00> : vector<8x8xf32>
    %150 = tpu.matmul %147, %148, %cst_55 {dimension_numbers = #tpu.dot_dimension_numbers<[1], [1], [0], [0], [0, 0, 1, 0], [], []>} : vector<8x8xf32>, vector<8x8xf32>, vector<8x8xf32> -> vector<8x8xf32>
    %cst_56 = arith.constant dense<0xFF800000> : vector<8xf32>
    %151 = vector.multi_reduction <maximumf>, %150, %cst_56 [1] : vector<8x8xf32> to vector<8xf32>
    %152 = vector.shape_cast %151 : vector<8xf32> to vector<8x1xf32>
    %153 = vector.broadcast %152 : vector<8x1xf32> to vector<8x8xf32>
    %154 = arith.subf %150, %153 : vector<8x8xf32>
    %155 = math.exp %154 : vector<8x8xf32>
    %cst_57 = arith.constant dense<0.000000e+00> : vector<8xf32>
    %156 = vector.multi_reduction <add>, %155, %cst_57 [1] : vector<8x8xf32> to vector<8xf32>
    %157 = vector.shape_cast %156 : vector<8xf32> to vector<8x1xf32>
    %158 = tpu.reciprocal %157 {approx = true} : vector<8x1xf32> -> vector<8x1xf32>
    %159 = vector.broadcast %158 : vector<8x1xf32> to vector<8x8xf32>
    %160 = arith.mulf %155, %159 : vector<8x8xf32>
    %cst_58 = arith.constant dense<0.000000e+00> : vector<8x8xf32>
    %161 = tpu.matmul %160, %149, %cst_58 {dimension_numbers = #tpu.dot_dimension_numbers<[1], [0], [0], [1], [0, 0, 1, 1], [], []>} : vector<8x8xf32>, vector<8x8xf32>, vector<8x8xf32> -> vector<8x8xf32>
    %162 = vector.extract_strided_slice %92 {offsets = [24, 0], sizes = [8, 32], strides = [1, 1]} : vector<32x32xf32> to vector<8x32xf32>
    %cst_59 = arith.constant dense<0.000000e+00> : vector<8x32xf32>
    %163 = tpu.matmul %161, %162, %cst_59 {dimension_numbers = #tpu.dot_dimension_numbers<[1], [0], [0], [1], [0, 0, 1, 1], [], []>} : vector<8x8xf32>, vector<8x32xf32>, vector<8x32xf32> -> vector<8x32xf32>
    %164 = arith.addf %146, %163 : vector<8x32xf32>
    %165 = vector.broadcast %93 : vector<1x32xf32> to vector<8x32xf32>
    %166 = arith.addf %164, %165 : vector<8x32xf32>
    %c0_60 = arith.constant 0 : index
    %c0_61 = arith.constant 0 : index
    %167 = vector.load %arg9[%c0_60, %c0_61] : memref<32x32xf32, #tpu.memory_space<vmem>>, vector<32x32xf32>
    %cst_62 = arith.constant dense<0.000000e+00> : vector<8x32xf32>
    %168 = tpu.matmul %166, %167, %cst_62 {dimension_numbers = #tpu.dot_dimension_numbers<[1], [0], [0], [1], [0, 0, 1, 1], [], []>} : vector<8x32xf32>, vector<32x32xf32>, vector<8x32xf32> -> vector<8x32xf32>
    %c0_63 = arith.constant 0 : index
    %c0_64 = arith.constant 0 : index
    %169 = vector.load %arg10[%c0_63, %c0_64] : memref<1x32xf32, #tpu.memory_space<vmem>>, vector<1x32xf32>
    %170 = vector.broadcast %169 : vector<1x32xf32> to vector<8x32xf32>
    %171 = arith.addf %168, %170 : vector<8x32xf32>
    %c0_65 = arith.constant 0 : index
    %c0_66 = arith.constant 0 : index
    %c0_67 = arith.constant 0 : index
    %172 = vector.load %arg11[%c0_65, %c0_66, %c0_67] : memref<1x8x32xf32, #tpu.memory_space<vmem>>, vector<1x8x32xf32>
    %173 = vector.shape_cast %172 : vector<1x8x32xf32> to vector<8x32xf32>
    %174 = vector.shape_cast %171 : vector<8x32xf32> to vector<1x8x32xf32>
    tpu.vector_store %arg11[%c0_65, %c0_66, %c0_67], %174 {strides = array<i32>} : memref<1x8x32xf32, #tpu.memory_space<vmem>>, vector<1x8x32xf32>,
    return
  }
  func.func @transform_0(%arg0: i32) -> (i32, i32, i32) {
    %c0_i32 = arith.constant 0 : i32
    %c0_i32_0 = arith.constant 0 : i32
    %c0_i32_1 = arith.constant 0 : i32
    return %arg0, %c0_i32, %c0_i32_0 : i32, i32, i32
  }
  func.func @transform_1(%arg0: i32) -> (i32, i32) {
    %c0_i32 = arith.constant 0 : i32
    %c0_i32_0 = arith.constant 0 : i32
    %c0_i32_1 = arith.constant 0 : i32
    return %c0_i32, %c0_i32_0 : i32, i32
  }
  func.func @transform_2(%arg0: i32) -> (i32, i32) {
    %c0_i32 = arith.constant 0 : i32
    %c0_i32_0 = arith.constant 0 : i32
    %c0_i32_1 = arith.constant 0 : i32
    return %c0_i32, %c0_i32_0 : i32, i32
  }
  func.func @transform_3(%arg0: i32) -> (i32, i32) {
    %c0_i32 = arith.constant 0 : i32
    %c0_i32_0 = arith.constant 0 : i32
    %c0_i32_1 = arith.constant 0 : i32
    return %c0_i32, %c0_i32_0 : i32, i32
  }
  func.func @transform_4(%arg0: i32) -> (i32, i32) {
    %c0_i32 = arith.constant 0 : i32
    %c0_i32_0 = arith.constant 0 : i32
    %c0_i32_1 = arith.constant 0 : i32
    return %c0_i32, %c0_i32_0 : i32, i32
  }
  func.func @transform_5(%arg0: i32) -> (i32, i32) {
    %c0_i32 = arith.constant 0 : i32
    %c0_i32_0 = arith.constant 0 : i32
    %c0_i32_1 = arith.constant 0 : i32
    return %c0_i32, %c0_i32_0 : i32, i32
  }
  func.func @transform_6(%arg0: i32) -> (i32, i32) {
    %c0_i32 = arith.constant 0 : i32
    %c0_i32_0 = arith.constant 0 : i32
    %c0_i32_1 = arith.constant 0 : i32
    return %c0_i32, %c0_i32_0 : i32, i32
  }
  func.func @transform_7(%arg0: i32) -> (i32, i32) {
    %c0_i32 = arith.constant 0 : i32
    %c0_i32_0 = arith.constant 0 : i32
    %c0_i32_1 = arith.constant 0 : i32
    return %c0_i32, %c0_i32_0 : i32, i32
  }
  func.func @transform_8(%arg0: i32) -> (i32, i32) {
    %c0_i32 = arith.constant 0 : i32
    %c0_i32_0 = arith.constant 0 : i32
    %c0_i32_1 = arith.constant 0 : i32
    return %c0_i32, %c0_i32_0 : i32, i32
  }
  func.func @transform_9(%arg0: i32) -> (i32, i32) {
    %c0_i32 = arith.constant 0 : i32
    %c0_i32_0 = arith.constant 0 : i32
    %c0_i32_1 = arith.constant 0 : i32
    return %c0_i32, %c0_i32_0 : i32, i32
  }
  func.func @transform_10(%arg0: i32) -> (i32, i32, i32) {
    %c0_i32 = arith.constant 0 : i32
    %c0_i32_0 = arith.constant 0 : i32
    %c0_i32_1 = arith.constant 0 : i32
    return %arg0, %c0_i32, %c0_i32_0 : i32, i32, i32
  }
}

</mosaic_0001>

<bundles_post_ra>
// kernel: attentions_forward.1
= control target key start
LH: loop header
LB: loop body
LE: loop exit
PB: predicated region body
PF: predicated region fallthrough
CT: control target
= control target key end

     0   :  { %s2419_s0 = inlined_call_operand.hbm [shape: f32[2,8,32], index: 0, kind: input, shape index: {}]   ;;  %s2420_s1 = inlined_call_operand.hbm [shape: f32[32,96], index: 1, kind: input, shape index: {}]   ;;  %s2421_s2 = inlined_call_operand.hbm [shape: f32[32,32], index: 2, kind: input, shape index: {}]   ;;  %s2422_s3 = inlined_call_operand.vmem [shape: f32[1,32], index: 3, kind: input, shape index: {}]   ;;  %s2423_s4 = inlined_call_operand.hbm [shape: f32[32,32], index: 4, kind: input, shape index: {}]   ;;  %s2424_s5 = inlined_call_operand.hbm [shape: f32[32,64], index: 5, kind: input, shape index: {}]   ;;  %s2425_s6 = inlined_call_operand.hbm [shape: f32[32,32], index: 6, kind: input, shape index: {}]   ;;  %s2426_s7 = inlined_call_operand.vmem [shape: f32[1,32], index: 7, kind: input, shape index: {}]   ;;  %s2427_s8 = inlined_call_operand.hbm [shape: f32[32,32], index: 8, kind: input, shape index: {}]   ;;  %s2428_s9 = inlined_call_operand.hbm [shape: f32[1,32], index: 9, kind: input, shape index: {}]   ;;  %s2429_s10 = inlined_call_operand.hbm [shape: f32[2,8,32], index: 10, kind: output, shape index: {}]  }
   0x1   :  { %2430 = sst [smem:[#allocation23_spill]] %s2420_s1 }
   0x2   :  { %2431 = sst [smem:[#allocation24_spill]] %s2421_s2 }
   0x3   :  { %2432 = sst [smem:[#allocation25_spill]] %s2423_s4 }
   0x4   :  { %2433 = sst [smem:[#allocation26_spill]] %s2424_s5 }
   0x5   :  { %15 = vsyncpa [#allocation3], 0 }
   0x6   :  { %17 = vsyncpa [#allocation3 + $0x1], 0 }
   0x7   :  { %18 = vsyncpa [#allocation6], 0 }
   0x8   :  { %19 = vsyncpa [#allocation9], 0 }
   0x9   :  { %20 = vsyncpa [#allocation12], 0 }
   0xa   :  { %21 = vsyncpa [#allocation15], 0 }
   0xb   :  { %22 = vsyncpa [#allocation4], 0 }
   0xc   :  { %24 = vsyncpa [#allocation4 + $0x1], 0  ;;  %s2109_s13 = smov 0   ;;  %s2111_s14 = smov 0  }
   0xd   :  { %s2113_s15 = smov 0   ;;  %s2115_s16 = smov 0  }
   0xe LB: > { %s2434_s1 = sld [smem:[#allocation23_spill]]  ;;  %s2133_s20 = sadd.s32 4294967295, %s2032_s16   ;;  %s2032_s16 = sphi %s2115_s16, %s2448_s16   ;;  %s2028_s15 = sphi %s2113_s15, %s2447_s15   ;;  %s2024_s14 = sphi %s2111_s14, %s2446_s14   ;;  %s2020_s13 = sphi %s2109_s13, %s2445_s13  }
   0xf   : > { %p1484_p0 = scmp.ge.s32.totalorder %s2032_s16, 1  ;;  %p51_p1 = scmp.eq.s32.totalorder %s2133_s20, 0 }
  0x10   : > { %p276_p2 = scmp.lt.s32.totalorder %s2032_s16, 3  ;;  %s2034_s22 = smov [#allocation5]  }
  0x11   : > { %s289_s23 = sshll.u32 %s2034_s22, 4  ;;  %s2436_s4 = sld [smem:[#allocation25_spill]]  ;;  %s290_s23 = int_to_ptr.vmem [resolvable:$true] %s289_s23 }
  0x12   : > { %p2138_p3 = pnand %p1484_p0, %p276_p2  ;;  %s346_s30 = sshll.u32 %s2425_s6, 4  ;;  %s347_s30 = int_to_ptr.hbm [resolvable:$true] %s346_s30 }
  0x13   : > { %s2035_s11 = smov [#allocation8]   ;;  %s2036_s17 = smov 128  }
  0x14   : > { %s287_s19 = sshll.u32 %s2434_s1, 4  ;;  %p1577_p4 = pneg %p2138_p3  ;;  %s288_s19 = int_to_ptr.hbm [resolvable:$true] %s287_s19 }
  0x15   : > { %s320_s12 = sshll.u32 %s2035_s11, 4  ;;  %s2037_s18 = smov 8   ;;  %s321_s12 = int_to_ptr.vmem [resolvable:$true] %s320_s12 }
  0x16   : > { %p2150_p6 = pnand %p1577_p4, %p51_p1  ;;  %s2438_s2 = sld [smem:[#allocation24_spill]] }
  0x17   : > { %s318_s26 = sshll.u32 %s2436_s4, 4  ;;  %s2038_s28 = smov [#allocation11]   ;;  %s319_s26 = int_to_ptr.hbm [resolvable:$true] %s318_s26 }
  0x18   : > { %1580 = dma.hbm_to_vmem [thread:$0]  (!%p2150_p6), %s288_s19, 512, %s290_s23, [#allocation6], %s2036_s17, %s2036_s17, %s2037_s18  }
  0x19   : > { %1586 = dma.hbm_to_vmem [thread:$0]  (!%p2150_p6), %s319_s26, 512, %s321_s12, [#allocation9], %s2036_s17, %s2036_s17, %s2037_s18  }
  0x1a   : > { %s348_s29 = sshll.u32 %s2038_s28, 4  ;;  %s2039_s19 = smov [#allocation7]   ;;  %s349_s29 = int_to_ptr.vmem [resolvable:$true] %s348_s29 }
  0x1b   : > { %1592 = dma.hbm_to_vmem [thread:$0]  (!%p2150_p6), %s347_s30, 512, %s349_s29, [#allocation12], %s2036_s17, %s2036_s17, %s2037_s18  }
  0x1c   : > { %s301_s25 = sshll.u32 %s2438_s2, 4  ;;  %s303_s23 = sshll.u32 %s2039_s19, 4  ;;  %s302_s25 = int_to_ptr.hbm [resolvable:$true] %s301_s25  ;;  %s304_s23 = int_to_ptr.vmem [resolvable:$true] %s303_s23 }
  0x1d   : > { %s2439_s5 = sld [smem:[#allocation26_spill]]  ;;  %s363_s24 = sshll.u32 %s2427_s8, 4  ;;  %s364_s24 = int_to_ptr.hbm [resolvable:$true] %s363_s24 }
  0x1e   : > { %1583 = dma.hbm_to_vmem [thread:$0]  (!%p2150_p6), %s302_s25, 512, %s304_s23, [#allocation6], %s2036_s17, %s2036_s17, %s2037_s18  }
  0x1f   : > { %s2040_s30 = smov [#allocation10]   ;;  %s2041_s1 = smov [#allocation13]  }
  0x20   : > { %s334_s28 = sshll.u32 %s2040_s30, 4  ;;  %s365_s25 = sshll.u32 %s2041_s1, 4  ;;  %s335_s28 = int_to_ptr.vmem [resolvable:$true] %s334_s28  ;;  %s366_s25 = int_to_ptr.vmem [resolvable:$true] %s365_s25 }
  0x21   : > { %s378_s23 = sshll.u32 %s2428_s9, 4  ;;  %s2042_s11 = smov [#allocation14]   ;;  %s379_s23 = int_to_ptr.hbm [resolvable:$true] %s378_s23 }
  0x22   : > { %1595 = dma.hbm_to_vmem [thread:$0]  (!%p2150_p6), %s364_s24, 512, %s366_s25, [#allocation12], %s2036_s17, %s2036_s17, %s2037_s18  }
  0x23   : > { %s332_s26 = sshll.u32 %s2439_s5, 4  ;;  %s1483_s12 = sadd.s32 4294967294, %s2032_s16   ;;  %s333_s26 = int_to_ptr.hbm [resolvable:$true] %s332_s26 }
  0x24   : > { %1589 = dma.hbm_to_vmem [thread:$0]  (!%p2150_p6), %s333_s26, 512, %s335_s28, [#allocation9], %s2036_s17, %s2036_s17, %s2037_s18  }
  0x25   : > { %s380_s26 = sshll.u32 %s2042_s11, 4  ;;  %s2203_s22 = sadd.s32 1, %s2032_s16   ;;  %s381_s26 = int_to_ptr.vmem [resolvable:$true] %s380_s26 }
  0x26   : > { %1598 = dma.hbm_to_vmem [thread:$0]  (!%p2150_p6), %s379_s23, 16, %s381_s26, [#allocation15]  }
  0x27   : > { %s37_s30 = sadd.s32 1, %s2028_s15  ;;  %s34_s28 = ssub.s32 %s2032_s16, %s2203_s22 }
  0x28   : > { %p44_p7 = scmp.ne.s32.totalorder %s2028_s15, %s2024_s14  ;;  %p35_p8 = scmp.eq.s32.totalorder %s34_s28, 0 }
  0x29   : > { %p45_p9 = scmp.eq.s32.totalorder %s2032_s16, 0  ;;  %p50_p10 = scmp.ne.s32.totalorder %s2024_s14, %s2020_s13 }
  0x2a   : > { %p263_p11 = scmp.eq.s32.totalorder %s2133_s20, 1  ;;  %p269_p0 = scmp.eq.s32.totalorder %s1483_s12, 1 }
  0x2b   : > { %s2215_s17 = scalar_select %p35_p8, %s2028_s15, %s37_s30  }
  0x2c   : > { %p2219_p12 = por %p51_p1, %p50_p10  ;;  %p2223_p13 = por %p263_p11, %p44_p7 }
  0x2d   : > { %p46_p2 = por %p45_p9, %p44_p7  ;;  %s391_s24 = sand.u32 1, %s2028_s15  }
  0x2e   : > { %p2228_p4 = por %p269_p0, %p50_p10  ;;  %p1614_p6 = scmp.lt.s32.totalorder %s2032_s16, 2 }
  0x2f   : > { %s1493_s25 = sshll.u32 %s391_s24, 3  ;;  %s1494_s29 = sshll.u32 %s2032_s16, 3 }
  0x30   : > { %s399_s11 = scalar_lea.hbm %s2419_s0, %s1494_s29  ;;  %s395_s30 = scalar_lea.vmem [#allocation2], %s1493_s25 }
  0x31   : > { %s401_s26 = sshll.u32 %s399_s11, 4  ;;  %s403_s28 = sshll.u32 %s395_s30, 4  ;;  %s402_s26 = int_to_ptr.hbm [resolvable:$true] %s401_s26  ;;  %s404_s28 = int_to_ptr.vmem [resolvable:$true] %s403_s28 }
  0x32   : > { %p2237_p8 = pnand %p1614_p6, %p46_p2  ;;  %s392_s2 = scalar_lea.sflag [#allocation3], %s391_s24 }
  0x33   : > { %s1920_s4 = sshra.s32 %s402_s26, 4  ;;  %s1927_s25 = scalar_lea.hbm %s2419_s0, 16  ;;  %s1921_s4 = int_to_ptr.hbm [resolvable:$true] %s1920_s4 }
  0x34   : > { %s1922_s5 = scalar_lea.hbm %s1921_s4, 8  ;;  %p1924_p9 = pneg %p2237_p8 }
  0x35   : > { %p1923_p7 = scmp.ne.s32.totalorder %s1921_s4, %s1922_s5  ;;  %p1928_p0 = scmp.lt.s32.totalorder %s1921_s4, %s2419_s0 }
  0x36   : > { %p1929_p2 = scmp.lt.s32.totalorder %s1927_s25, %s1922_s5 }
  0x37   : > { %p1925_p10 = pnand %p1924_p9, %p1923_p7 }
  0x38   : > { %p1930_p6 = por %p1929_p2, %p1928_p0 }
  0x39   : > { %p1926_p11 = pneg %p1925_p10 }
  0x3b   : > { %p1931_p5 = pnand %p1930_p6, %p1926_p11 }
  0x3d   : > { %1934 = shalt.err (!%p1931_p5)
}
  0x3e   : > { %1602 = dma.hbm_to_vmem [thread:$0]  (!%p2237_p8), %s402_s26, 128, %s404_s28, %s392_s2  }
  0x3f   : > { %412 = sbr.rel (%p2138_p3) target bundleno = 2953 (0xb89), region = 60  ;;  %s2254_s24 = sand.u32 (!%p2138_p3), 1, %s2024_s14  }
  0x40   : > { %s1496_s30 = sshll.u32 (!%p2138_p3), %s2254_s24, 3  ;;  %s415_s29 = scalar_lea.sflag (!%p2138_p3), [#allocation3], %s2254_s24 }
  0x41   : > { %s418_s4 = scalar_lea.vmem (!%p2138_p3), [#allocation2], %s1496_s30 }
  0x44   : > { %1995 = dma.done.wait (%p2219_p12), %s415_s29, 128  }
  0x45   : > { %1997 = vsyncadd (%p2219_p12), %s415_s29, 4294967168 }
  0x46   : > { %1999 = dma.done.wait (%p51_p1), [#allocation6], 1024  }
  0x47   : > { %2001 = vsyncadd (%p51_p1), [#allocation6], 4294966272 }
  0x48   : > { %2003 = dma.done.wait (%p51_p1), [#allocation9], 1024  }
  0x49   : > { %2005 = vsyncadd (%p51_p1), [#allocation9], 4294966272 }
  0x4a   : > { %2007 = dma.done.wait (%p51_p1), [#allocation12], 1024  }
  0x4b   : > { %2009 = vsyncadd (%p51_p1), [#allocation12], 4294966272 }
  0x4c   : > { %2011 = dma.done.wait (%p51_p1), [#allocation15], 16  }
  0x4d   : > { %2013 = vsyncadd (%p51_p1), [#allocation15], 4294967280  ;;  %v495_v0 = vld [vmem:[#allocation5 + $0x18] sm:$0xff]  ;;  %v494_v1 = vld [vmem:[#allocation5 + $0x10] sm:$0xff]  ;;  %vm496_vm0 = vcmask 261120   ;;  %s2043_s2 = smov 88  }
  0x4e   : > { %512 = vmatpush.msra.mxu0 %v495_v0  ;;  %v493_v2 = vld [vmem:[#allocation5 + $0x8] sm:$0xff]  ;;  %v492_v3 = vld [vmem:[#allocation5] sm:$0xff]  ;;  %v2280_v4 = vld [vmem:[%s418_s4] sm:$0xff]  ;;  %s2044_s5 = smov 96   ;;  %s2045_s21 = smov 120   ;;  %vm529_vm1 = vcmask 64512  }
  0x4f   : > { %s2046_s27 = smov 72   ;;  %s2047_s26 = smov 104   ;;  %v521_v7 = vld [vmem:[#allocation7] sm:$0xff]  ;;  %v522_v61 = vld [vmem:[#allocation7 + $0x8] sm:$0xff]  ;;  %v523_v62 = vld [vmem:[#allocation7 + $0x10] sm:$0xff] }
  0x50   : > { %513 = vmatpush.msra.mxu0 %v494_v1  ;;  %s2048_s28 = smov 80   ;;  %s2049_s12 = smov 64   ;;  %v524_v1 = vld [vmem:[#allocation7 + $0x18] sm:$0xff] }
  0x51   : > { %s2050_s19 = smov 112   ;;  %s2051_s25 = smov 48  }
  0x52   : > { %514 = vmatpush.msra.mxu0 %v493_v2  ;;  %s2052_s23 = smov 56   ;;  %s2053_s11 = smov 40  }
  0x54   : > { %515 = vmatpush.msra.mxu0 %v492_v3  ;;  %v916_v3 = vld [vmem:[#allocation10 + $0x18] sm:$0xff] }
  0x55   : > { %1505 = vmatmul.msk.f32.vlgmr.msra.gmra.mxu0 %vm496_vm0, %v2280_v4 }
  0xd2   : > { %v2284_v5 = vpop.f32.mrf.mxu0 }
  0xd3   : > { %594 = vrot.lane.b32.xlu2 %v2284_v5, %s2043_s2  ;;  %527 = vrot.lane.b32.xlu0 %v2284_v5, %s2044_s5  ;;  %v520_v6 = vmul.f32 0.35355338, %v2284_v5 }
  0xdb   : > { %592 = vrot.lane.b32.xlu2 %v520_v6, %s2045_s21 }
  0xe3   : > { %794 = vrot.lane.b32.xlu2 %v2284_v5, %s2046_s27 }
  0xeb   : > { %792 = vrot.lane.b32.xlu2 %v520_v6, %s2047_s26 }
  0xf3   : > { %705 = vrot.lane.b32.xlu2 %v2284_v5, %s2048_s28 }
 0x12d   : > { %v595_v8 = vpop.permute.xlu2 %594 }
 0x12e   : > { %1509 = vmatpush.xpose.msk.msra.mxu3 %vm529_vm1, %v595_v8  ;;  %v913_v8 = vld [vmem:[#allocation10] sm:$0xff] }
 0x132   : > { %698 = vmatpush.msrb.mxu3 %v521_v7  ;;  %v914_v7 = vld [vmem:[#allocation10 + $0x8] sm:$0xff] }
 0x135   : > { %v593_v9 = vpop.permute.xlu2 %592 }
 0x136   : > { %1510 = vmatmul.msk.f32.vlgmr.msra.gmra.mxu3 %vm529_vm1, %v593_v9  ;;  %v887_v9 = vld [vmem:[#allocation8 + $0x10] sm:$0xff] }
 0x13d   : > { %v795_v10 = vpop.permute.xlu2 %794 }
 0x13e   : > { %1518 = vmatpush.xpose.msk.msra.mxu3 %vm529_vm1, %v795_v10  ;;  %v886_v10 = vld [vmem:[#allocation8 + $0x8] sm:$0xff] }
 0x145   : > { %v528_v11 = vpop.permute.xlu0 %527  ;;  %v793_v12 = vpop.permute.xlu2 %792 }
 0x146   : > { %1506 = vmatpush.xpose.msk.msra.mxu1 %vm529_vm1, %v528_v11  ;;  %v885_v11 = vld [vmem:[#allocation8] sm:$0xff] }
 0x149   : > { %1507 = vmatmul.msk.f32.vlgmr.msra.gmra.mxu1 %vm529_vm1, %v520_v6 }
 0x14a   : > { %675 = vmatpush.msrb.mxu1 %v522_v61 }
 0x14c   : > { %786 = vmatpush.msra.mxu1 %v523_v62 }
 0x14d   : > { %v706_v13 = vpop.permute.xlu2 %705 }
 0x14e   : > { %1514 = vmatpush.xpose.msk.msrb.mxu0 %vm529_vm1, %v706_v13 }
 0x1b9   : > { %v617_v14 = vpop.f32.mrf.mxu3 }
 0x1ba   : > { %v620_v15 = vsel %vm529_vm1, %v617_v14, -inf }
 0x1bb   : > { %621 = vmax.xlane.f32.xlu2 %v620_v15 }
 0x1c6   : > { %v552_v16 = vpop.f32.mrf.mxu1 }
 0x1c7   : > { %v555_v17 = vsel %vm529_vm1, %v552_v16, -inf }
 0x1c8   : > { %556 = vmax.xlane.f32.xlu0 %v555_v17 }
 0x22e   : > { %v622_v31 = vpop.xlane.xlu2 %621 }
 0x22f   : > { %v623_v32 = vsub.f32 %v617_v14, %v622_v31 }
 0x231   : > { %v624_v34 = vmul.f32 1.442695, %v623_v32 }
 0x23b   : > { %v557_v18 = vpop.xlane.xlu0 %556 }
 0x23c   : > { %v558_v19 = vsub.f32 %v552_v16, %v557_v18  ;;  %v1675_v16 = vld [vmem:[%s2422_s3] ss:$0 sm:$0xff] }
 0x23e   : > { %v559_v20 = vmul.f32 1.442695, %v558_v19 }
 0x240   : > { %1678 = vpow2.f32 %v559_v20 }
 0x246   : > { %v1679_v21 = vpop.eup %1678 }
 0x247   : > { %v561_v22 = vsel %vm529_vm1, %v1679_v21, 0.0 }
 0x248   : > { %562 = vadd.xlane.f32.xlu1 %v561_v22 }
 0x261   : > { %566 = vrot.lane.b32.xlu1 %v2284_v5, %s2049_s12  ;;  %s490_s12 = scalar_lea.vmem [#allocation16], %s1496_s30  ;;  %s1970_s30 = scalar_lea.hbm %s2429_s10, 16 }
 0x269   : > { %703 = vrot.lane.b32.xlu1 %v520_v6, %s2050_s19  ;;  %v888_v6 = vld [vmem:[#allocation8 + $0x18] sm:$0xff] }
 0x2bb   : > { %v563_v23 = vpop.xlane.xlu1 %562 }
 0x2bc   : > { %1680 = vrcp.f32 %v563_v23 }
 0x2bd   : > { %1682 = vpow2.f32 %v624_v34 }
 0x2c2   : > { %v1681_v24 = vpop.eup %1680 }
 0x2c3   : > { %v565_v26 = vmul.f32 %v1681_v24, %v1679_v21  ;;  %v1683_v40 = vpop.eup %1682 }
 0x2c4   : > { %v626_v41 = vsel %vm529_vm1, %v1683_v40, 0.0 }
 0x2d3   : > { %v567_v25 = vpop.permute.xlu1 %566 }
 0x2d4   : > { %587 = vmatpush.msra.mxu2 %v567_v25 }
 0x2d5   : > { %1508 = vmatmul.msk.f32.vlgmr.msra.gmra.mxu2 %vm529_vm1, %v565_v26 }
 0x2db   : > { %v704_v27 = vpop.permute.xlu1 %703 }
 0x2dc   : > { %1515 = vmatmul.msk.f32.vlgmr.msrb.gmra.mxu0 %vm529_vm1, %v704_v27 }
 0x358   : > { %v589_v28 = vpop.f32.mrf.mxu2 }
 0x359   : > { %1513 = vmatmul.msk.f32.vlgmr.msrb.gmra.mxu3 %vm529_vm1, %v589_v28  ;;  %v728_v29 = vpop.f32.mrf.mxu0 }
 0x35a   : > { %v731_v30 = vsel %vm529_vm1, %v728_v29, -inf  ;;  %929 = vmatpush.msrb.mxu3 %v916_v3 }
 0x35b   : > { %732 = vmax.xlane.f32.xlu1 %v731_v30 }
 0x361   : > { %1519 = vmatmul.msk.f32.vlgmr.msra.gmra.mxu3 %vm529_vm1, %v793_v12 }
 0x374   : > { %742 = vrot.lane.b32.xlu1 %v2284_v5, %s2051_s25 }
 0x3ce   : > { %v733_v35 = vpop.xlane.xlu1 %732 }
 0x3cf   : > { %v734_v36 = vsub.f32 %v728_v29, %v733_v35 }
 0x3d1   : > { %v735_v39 = vmul.f32 1.442695, %v734_v36 }
 0x3d3   : > { %1684 = vpow2.f32 %v735_v39 }
 0x3d9   : > { %v1685_v42 = vpop.eup %1684 }
 0x3da   : > { %v737_v43 = vsel %vm529_vm1, %v1685_v42, 0.0 }
 0x3dc   : > { %v2314_v33 = vpop.f32.mrf.mxu3 }
 0x3e4   : > { %v817_v37 = vpop.f32.mrf.mxu3 }
 0x3e5   : > { %v820_v38 = vsel %vm529_vm1, %v817_v37, -inf }
 0x3e6   : > { %821 = vmax.xlane.f32.xlu0 %v820_v38  ;;  %v743_v54 = vpop.permute.xlu1 %742 }
 0x3ee   : > { %627 = vadd.xlane.f32.xlu0 %v626_v41  ;;  %v937_v41 = vld [vmem:[#allocation11] sm:$0xff] }
 0x3f6   : > { %738 = vadd.xlane.f32.xlu0 %v737_v43 }
 0x40a   : > { %631 = vrot.lane.b32.xlu0 %v2284_v5, %s2052_s23  ;;  %s1331_s23 = scalar_lea.sflag [#allocation4], %s2254_s24 }
 0x459   : > { %v822_v44 = vpop.xlane.xlu0 %821 }
 0x45a   : > { %v823_v45 = vsub.f32 %v817_v37, %v822_v44 }
 0x45c   : > { %v824_v46 = vmul.f32 1.442695, %v823_v45 }
 0x45e   : > { %1686 = vpow2.f32 %v824_v46 }
 0x461   : > { %v628_v49 = vpop.xlane.xlu0 %627 }
 0x462   : > { %1688 = vrcp.f32 %v628_v49 }
 0x464   : > { %v1687_v47 = vpop.eup %1686 }
 0x465   : > { %v826_v48 = vsel %vm529_vm1, %v1687_v47, 0.0 }
 0x466   : > { %827 = vadd.xlane.f32.xlu2 %v826_v48 }
 0x468   : > { %v1689_v51 = vpop.eup %1688 }
 0x469   : > { %v739_v50 = vpop.xlane.xlu0 %738  ;;  %v630_v53 = vmul.f32 %v1689_v51, %v1683_v40 }
 0x46a   : > { %1690 = vrcp.f32 %v739_v50 }
 0x470   : > { %v1691_v55 = vpop.eup %1690 }
 0x471   : > { %v741_v56 = vmul.f32 %v1691_v55, %v1685_v42 }
 0x47c   : > { %v632_v52 = vpop.permute.xlu0 %631 }
 0x47d   : > { %652 = vmatpush.msrb.mxu2 %v632_v52 }
 0x47e   : > { %831 = vrot.lane.b32.xlu2 %v2284_v5, %s2053_s11  ;;  %1511 = vmatmul.msk.f32.vlgmr.msrb.gmra.mxu2 %vm529_vm1, %v630_v53  ;;  %v915_v5 = vld [vmem:[#allocation10 + $0x10] sm:$0xff] }
 0x47f   : > { %763 = vmatpush.msra.mxu2 %v743_v54  ;;  %930 = vmatpush.msrb.mxu3 %v915_v5  ;;  %v938_v54 = vld [vmem:[#allocation11 + $0x8] sm:$0xff] }
 0x481   : > { %875 = vmatpush.msrb.mxu2 %v524_v1  ;;  %931 = vmatpush.msrb.mxu3 %v914_v7 }
 0x483   : > { %932 = vmatpush.msrb.mxu3 %v913_v8 }
 0x484   : > { %1523 = vmatmul.msk.f32.vlgmr.msrb.gmra.mxu3 %vm496_vm0, %v2280_v4 }
 0x486   : > { %1516 = vmatmul.msk.f32.vlgmr.msra.gmra.mxu2 %vm529_vm1, %v741_v56 }
 0x4d9   : > { %v828_v57 = vpop.xlane.xlu2 %827 }
 0x4da   : > { %1692 = vrcp.f32 %v828_v57 }
 0x4e0   : > { %v1693_v58 = vpop.eup %1692 }
 0x4e1   : > { %v830_v59 = vmul.f32 %v1693_v58, %v1687_v47  ;;  %v832_v60 = vpop.permute.xlu2 %831 }
 0x4e2   : > { %852 = vmatpush.msra.mxu0 %v832_v60 }
 0x4e3   : > { %1520 = vmatmul.msk.f32.vlgmr.msra.gmra.mxu0 %vm529_vm1, %v830_v59 }
 0x501   : > { %v654_v63 = vpop.f32.mrf.mxu2 }
 0x502   : > { %1512 = vmatmul.msk.f32.vlgmr.msrb.gmra.mxu1 %vm529_vm1, %v654_v63 }
 0x503   : > { %904 = vmatpush.msrb.mxu1 %v888_v6 }
 0x505   : > { %905 = vmatpush.msrb.mxu1 %v887_v9 }
 0x507   : > { %906 = vmatpush.msrb.mxu1 %v886_v10  ;;  %v2335_v4 = vpop.f32.mrf.mxu3 }
 0x508   : > { %979 = vrot.lane.b32.xlu2 %v2335_v4, %s2044_s5  ;;  %1524 = vmatpush.xpose.msk.msrb.mxu0 %vm529_vm1, %v2335_v4 }
 0x509   : > { %v765_v0 = vpop.f32.mrf.mxu2  ;;  %907 = vmatpush.msrb.mxu1 %v885_v11 }
 0x50a   : > { %1517 = vmatmul.msk.f32.vlgmr.msra.gmra.mxu1 %vm529_vm1, %v765_v0 }
 0x50c   : > { %1088 = vmatpush.msra.mxu0 %v938_v54 }
 0x510   : > { %1007 = vrot.lane.b32.xlu2 %v2335_v4, %s2045_s21 }
 0x560   : > { %v854_v2 = vpop.f32.mrf.mxu0 }
 0x561   : > { %1521 = vmatmul.msk.f32.vlgmr.msrb.gmra.mxu2 %vm529_vm1, %v854_v2 }
 0x562   : > { %v980_v20 = vpop.permute.xlu2 %979 }
 0x563   : > { %1000 = vmatpush.msra.mxu2 %v980_v20  ;;  %v1298_v20 = vld [vmem:[#allocation13] sm:$0xff] }
 0x565   : > { %1111 = vmatpush.msrb.mxu2 %v937_v41 }
 0x56a   : > { %v1008_v21 = vpop.permute.xlu2 %1007 }
 0x56b   : > { %1527 = vmatpush.xpose.msk.msra.mxu1 %vm529_vm1, %v1008_v21 }
 0x57f   : > { %v677_v12 = vpop.f32.mrf.mxu1 }
 0x580   : > { %v701_v14 = vadd.f32 %v2314_v33, %v677_v12 }
 0x587   : > { %v788_v13 = vpop.f32.mrf.mxu1 }
 0x588   : > { %v791_v15 = vadd.f32 %v788_v13, %v701_v14  ;;  %v940_v14 = vld [vmem:[#allocation11 + $0x18] sm:$0xff] }
 0x5e4   : > { %v877_v17 = vpop.f32.mrf.mxu2 }
 0x5e5   : > { %v880_v18 = vadd.f32 %v877_v17, %v791_v15  ;;  %v939_v15 = vld [vmem:[#allocation11 + $0x10] sm:$0xff] }
 0x5e7   : > { %v884_v19 = vadd.f32 %v1675_v16, %v880_v18  ;;  %v1301_v18 = vld [vmem:[#allocation13 + $0x18] sm:$0xff] }
 0x5e9   : > { %1522 = vmatmul.msk.f32.vlgmr.msrb.gmra.mxu1 %vm496_vm0, %v884_v19  ;;  %v1300_v19 = vld [vmem:[#allocation13 + $0x10] sm:$0xff] }
 0x666   : > { %v909_v22 = vpop.f32.mrf.mxu1 }
 0x667   : > { %v912_v23 = vmul.f32 0.35355338, %v909_v22 }
 0x669   : > { %1005 = vrot.lane.b32.xlu2 %v912_v23, %s2045_s21  ;;  %1525 = vmatmul.msk.f32.vlgmr.msrb.gmra.mxu0 %vm529_vm1, %v912_v23  ;;  %s1542_s21 = sshll.u32 %s2133_s20, 3 }
 0x66a   : > { %1199 = vmatpush.msrb.mxu0 %v939_v15 }
 0x671   : > { %1205 = vrot.lane.b32.xlu2 %v912_v23, %s2047_s26 }
 0x679   : > { %1118 = vrot.lane.b32.xlu2 %v2335_v4, %s2050_s19 }
 0x6c3   : > { %v1006_v24 = vpop.permute.xlu2 %1005 }
 0x6c4   : > { %1528 = vmatmul.msk.f32.vlgmr.msra.gmra.mxu1 %vm529_vm1, %v1006_v24 }
 0x6cb   : > { %v1206_v25 = vpop.permute.xlu2 %1205 }
 0x6d3   : > { %v1119_v26 = vpop.permute.xlu2 %1118 }
 0x6d4   : > { %1532 = vmatpush.xpose.msk.msrb.mxu1 %vm529_vm1, %v1119_v26 }
 0x6e6   : > { %v965_v27 = vpop.f32.mrf.mxu0 }
 0x6e7   : > { %v968_v28 = vsel %vm529_vm1, %v965_v27, -inf }
 0x6e8   : > { %969 = vmax.xlane.f32.xlu0 %v968_v28 }
 0x6fc   : > { %1207 = vrot.lane.b32.xlu0 %v2335_v4, %s2047_s26 }
 0x741   : > { %v1030_v29 = vpop.f32.mrf.mxu1 }
 0x742   : > { %v1033_v30 = vsel %vm529_vm1, %v1030_v29, -inf }
 0x743   : > { %1034 = vmax.xlane.f32.xlu2 %v1033_v30 }
 0x75b   : > { %v970_v31 = vpop.xlane.xlu0 %969 }
 0x75c   : > { %v971_v32 = vsub.f32 %v965_v27, %v970_v31 }
 0x75e   : > { %v972_v33 = vmul.f32 1.442695, %v971_v32 }
 0x760   : > { %1694 = vpow2.f32 %v972_v33 }
 0x766   : > { %v1695_v34 = vpop.eup %1694 }
 0x767   : > { %v974_v35 = vsel %vm529_vm1, %v1695_v34, 0.0 }
 0x768   : > { %975 = vadd.xlane.f32.xlu1 %v974_v35 }
 0x76e   : > { %v1208_v45 = vpop.permute.xlu0 %1207 }
 0x781   : > { %1116 = vrot.lane.b32.xlu1 %v912_v23, %s2050_s19  ;;  %s1343_s19 = sshll.u32 %s490_s12, 4  ;;  %s1344_s19 = int_to_ptr.vmem [resolvable:$true] %s1343_s19 }
 0x7b6   : > { %v1035_v36 = vpop.xlane.xlu2 %1034 }
 0x7b7   : > { %v1036_v37 = vsub.f32 %v1030_v29, %v1035_v36  ;;  %v1677_v29 = vld [vmem:[#allocation14] ss:$0 sm:$0xff] }
 0x7b9   : > { %v1037_v38 = vmul.f32 1.442695, %v1036_v37 }
 0x7bb   : > { %1696 = vpow2.f32 %v1037_v38 }
 0x7c1   : > { %v1697_v39 = vpop.eup %1696 }
 0x7c2   : > { %v1039_v40 = vsel %vm529_vm1, %v1697_v39, 0.0 }
 0x7c3   : > { %1040 = vadd.xlane.f32.xlu2 %v1039_v40 }
 0x7db   : > { %1044 = vrot.lane.b32.xlu2 %v2335_v4, %s2043_s2  ;;  %v976_v42 = vpop.xlane.xlu1 %975 }
 0x7dc   : > { %1698 = vrcp.f32 %v976_v42 }
 0x7e2   : > { %v1699_v43 = vpop.eup %1698 }
 0x7e3   : > { %v978_v44 = vmul.f32 %v1699_v43, %v1695_v34 }
 0x7e5   : > { %1526 = vmatmul.msk.f32.vlgmr.msra.gmra.mxu2 %vm529_vm1, %v978_v44 }
 0x7e6   : > { %1536 = vmatpush.xpose.msk.msra.mxu2 %vm529_vm1, %v1208_v45 }
 0x7f3   : > { %v1117_v46 = vpop.permute.xlu1 %1116 }
 0x7f4   : > { %1533 = vmatmul.msk.f32.vlgmr.msrb.gmra.mxu1 %vm529_vm1, %v1117_v46 }
 0x836   : > { %v1041_v47 = vpop.xlane.xlu2 %1040 }
 0x837   : > { %1700 = vrcp.f32 %v1041_v47 }
 0x83d   : > { %v1701_v48 = vpop.eup %1700 }
 0x83e   : > { %v1043_v49 = vmul.f32 %v1701_v48, %v1697_v39  ;;  %v1045_v50 = vpop.permute.xlu2 %1044 }
 0x83f   : > { %1065 = vmatpush.msra.mxu3 %v1045_v50 }
 0x840   : > { %1529 = vmatmul.msk.f32.vlgmr.msra.gmra.mxu3 %vm529_vm1, %v1043_v49 }
 0x868   : > { %v1002_v51 = vpop.f32.mrf.mxu2 }
 0x869   : > { %1531 = vmatmul.msk.f32.vlgmr.msrb.gmra.mxu2 %vm529_vm1, %v1002_v51 }
 0x871   : > { %v1141_v52 = vpop.f32.mrf.mxu1  ;;  %1537 = vmatmul.msk.f32.vlgmr.msra.gmra.mxu2 %vm529_vm1, %v1206_v25  ;;  %v1676_v25 = vld [vmem:[%s2426_s7] ss:$0 sm:$0xff] }
 0x872   : > { %v1144_v53 = vsel %vm529_vm1, %v1141_v52, -inf }
 0x873   : > { %1145 = vmax.xlane.f32.xlu0 %v1144_v53 }
 0x8c3   : > { %v1067_v55 = vpop.f32.mrf.mxu3 }
 0x8c4   : > { %1530 = vmatmul.msk.f32.vlgmr.msra.gmra.mxu0 %vm529_vm1, %v1067_v55 }
 0x8c5   : > { %1321 = vmatpush.msra.mxu0 %v1301_v18 }
 0x8c7   : > { %1322 = vmatpush.msra.mxu0 %v1300_v19 }
 0x8e6   : > { %v1146_v56 = vpop.xlane.xlu0 %1145 }
 0x8e7   : > { %v1147_v57 = vsub.f32 %v1141_v52, %v1146_v56 }
 0x8e9   : > { %v1148_v58 = vmul.f32 1.442695, %v1147_v57 }
 0x8eb   : > { %1702 = vpow2.f32 %v1148_v58 }
 0x8ec   : > { %v1113_v59 = vpop.f32.mrf.mxu2 }
 0x8f1   : > { %v1703_v60 = vpop.eup %1702 }
 0x8f2   : > { %v1150_v61 = vsel %vm529_vm1, %v1703_v60, 0.0 }
 0x8f3   : > { %1151 = vadd.xlane.f32.xlu0 %v1150_v61 }
 0x8f4   : > { %v1230_v62 = vpop.f32.mrf.mxu2 }
 0x8f5   : > { %v1233_v63 = vsel %vm529_vm1, %v1230_v62, -inf }
 0x8f6   : > { %1234 = vmax.xlane.f32.xlu1 %v1233_v63 }
 0x90f   : > { %1244 = vrot.lane.b32.xlu1 %v2335_v4, %s2046_s27 }
 0x941   : > { %v1090_v21 = vpop.f32.mrf.mxu0 }
 0x942   : > { %v1114_v22 = vadd.f32 %v1113_v59, %v1090_v21 }
 0x966   : > { %v1152_v7 = vpop.xlane.xlu0 %1151 }
 0x969   : > { %v1235_v0 = vpop.xlane.xlu1 %1234 }
 0x96a   : > { %v1236_v1 = vsub.f32 %v1230_v62, %v1235_v0 }
 0x96c   : > { %v1237_v2 = vmul.f32 1.442695, %v1236_v1 }
 0x96e   : > { %1704 = vpow2.f32 %v1237_v2 }
 0x974   : > { %v1705_v3 = vpop.eup %1704 }
 0x975   : > { %v1239_v5 = vsel %vm529_vm1, %v1705_v3, 0.0 }
 0x976   : > { %1240 = vadd.xlane.f32.xlu0 %v1239_v5 }
 0x981   : > { %v1245_v6 = vpop.permute.xlu1 %1244 }
 0x982   : > { %1265 = vmatpush.msra.mxu1 %v1245_v6 }
 0x98a   : > { %1155 = vrot.lane.b32.xlu0 %v2335_v4, %s2048_s28  ;;  %v1299_v4 = vld [vmem:[#allocation13 + $0x8] sm:$0xff]  ;;  %s1341_s28 = scalar_lea.hbm %s2429_s10, %s1542_s21 }
 0x98b   : > { %1323 = vmatpush.msra.mxu0 %v1299_v4  ;;  %s1345_s25 = sshll.u32 %s1341_s28, 4  ;;  %s1346_s25 = int_to_ptr.hbm [resolvable:$true] %s1345_s25 }
 0x98c   : > { %s1964_s11 = sshra.s32 %s1346_s25, 4  ;;  %s1965_s11 = int_to_ptr.hbm [resolvable:$true] %s1964_s11 }
 0x98d   : > { %1324 = vmatpush.msra.mxu0 %v1298_v20  ;;  %s1966_s20 = scalar_lea.hbm %s1965_s11, 8  ;;  %p1971_p12 = scmp.lt.s32.totalorder %s1965_s11, %s2429_s10 }
 0x98e   : > { %p1967_p1 = scmp.ne.s32.totalorder %s1965_s11, %s1966_s20  ;;  %p1972_p8 = scmp.lt.s32.totalorder %s1970_s30, %s1966_s20 }
 0x990   : > { %p1968_p3 = pnand %p1967_p1, %p2223_p13  ;;  %p1973_p7 = por %p1972_p8, %p1971_p12 }
 0x992   : > { %p1969_p5 = pneg %p1968_p3 }
 0x994   : > { %p1974_p9 = pnand %p1973_p7, %p1969_p5 }
 0x9e9   : > { %v1241_v8 = vpop.xlane.xlu0 %1240 }
 0x9ea   : > { %1706 = vrcp.f32 %v1241_v8 }
 0x9eb   : > { %1708 = vrcp.f32 %v1152_v7 }
 0x9f0   : > { %v1707_v9 = vpop.eup %1706 }
 0x9f1   : > { %v1243_v10 = vmul.f32 %v1707_v9, %v1705_v3  ;;  %v1709_v11 = vpop.eup %1708 }
 0x9f2   : > { %v1154_v12 = vmul.f32 %v1709_v11, %v1703_v60 }
 0x9f3   : > { %1538 = vmatmul.msk.f32.vlgmr.msra.gmra.mxu1 %vm529_vm1, %v1243_v10 }
 0x9fc   : > { %v1156_v13 = vpop.permute.xlu0 %1155 }
 0x9fd   : > { %1176 = vmatpush.msrb.mxu3 %v1156_v13 }
 0x9fe   : > { %1534 = vmatmul.msk.f32.vlgmr.msrb.gmra.mxu3 %vm529_vm1, %v1154_v12 }
 0x9ff   : > { %1288 = vmatpush.msra.mxu3 %v940_v14 }
 0xa70   : > { %v1267_v16 = vpop.f32.mrf.mxu1 }
 0xa71   : > { %1539 = vmatmul.msk.f32.vlgmr.msra.gmra.mxu3 %vm529_vm1, %v1267_v16 }
 0xa81   : > { %v1178_v17 = vpop.f32.mrf.mxu3 }
 0xa82   : > { %1535 = vmatmul.msk.f32.vlgmr.msrb.gmra.mxu0 %vm529_vm1, %v1178_v17 }
 0xaf4   : > { %v1290_v26 = vpop.f32.mrf.mxu3 }
 0xaff   : > { %v1201_v23 = vpop.f32.mrf.mxu0 }
 0xb00   : > { %v1204_v24 = vadd.f32 %v1201_v23, %v1114_v22 }
 0xb02   : > { %v1293_v27 = vadd.f32 %v1290_v26, %v1204_v24 }
 0xb04   : > { %v1297_v28 = vadd.f32 %v1676_v25, %v1293_v27 }
 0xb06   : > { %1540 = vmatmul.msk.f32.vlgmr.msra.gmra.mxu0 %vm496_vm0, %v1297_v28 }
 0xb83   : > { %v1326_v30 = vpop.f32.mrf.mxu0 }
 0xb84   : > { %v1327_v31 = vadd.f32 %v1677_v29, %v1326_v30 }
 0xb86   : > { %1329 = vst.msk [vmem:[%s490_s12] sm:$0xff] %vm496_vm0, %v1327_v31 }
 0xb87   : > { %1977 = shalt.err (!%p1974_p9)
}
 0xb88   : > { %1575 = dma.vmem_to_hbm [thread:$0]  (%p2223_p13), %s1344_s19, 128, %s1346_s25, %s1331_s23  }
 0xb89 PF: > { %s1357_s24 = sand.u32 1, %s2020_s13   ;;  %p2444_p10 = scmp.ge.s32.totalorder %s2032_s16, 2 }
 0xb8a   : > { %s1358_s21 = scalar_lea.sflag [#allocation4], %s1357_s24 }
 0xb8b   : > { %p1604_p11 = pnand %p2444_p10, %p2228_p4 }
 0xb8d   : > { %p1605_p0 = pneg %p1604_p11 }
 0xb8f   : > { %2015 = dma.done.wait (%p1605_p0), %s1358_s21, 128  }
 0xb90   : > { %2017 = vsyncadd (%p1605_p0), %s1358_s21, 4294967168  ;;  %p27_p2 = scmp.ge.s32.totalorder %s2203_s22, 4   ;;  %s2445_s13 = smov %s2024_s14 }
 0xb91   : > { %s2446_s14 = smov %s2028_s15  ;;  %s2447_s15 = smov %s2215_s17 }
 0xb92   : > { %s2448_s16 = smov %s2203_s22  ;;  %29 = sbr.rel (!%p27_p2) target bundleno = 14 (0xe), region = 133 }
 0xb97   :  { %1364 = vsyncpa [#allocation3], 1 }
 0xb98   :  { %1366 = vsyncpa [#allocation3 + $0x1], 1 }
 0xb99   :  { %1367 = vsyncpa [#allocation6], 1 }
 0xb9a   :  { %1368 = vsyncpa [#allocation9], 1 }
 0xb9b   :  { %1369 = vsyncpa [#allocation12], 1 }
 0xb9c   :  { %1370 = vsyncpa [#allocation15], 1 }
 0xb9d   :  { %1371 = vsyncpa [#allocation4], 1 }
 0xb9e   :  { %1373 = vsyncpa [#allocation4 + $0x1], 1 }

</bundles_post_ra>
